<compile_context>
chip_gen: v7x
topology: tpu7x:2x2x1
jax: 0.10.0
libtpu: 0.0.40
codegen_flags: <defaults>
</compile_context>

<pallas_src>
import functools

import jax
import jax.numpy as jnp
import numpy as np
from jax.experimental import pallas as pl
from jax.experimental.pallas import tpu as pltpu


_NUM_CLASSES = 10
_PAD_CLASSES = 128          # pad class dim to a full lane tile (unmasked vst)
_NEG_BIG = -1e30            # "minus infinity" for padded logit lanes


# ---------------------------------------------------------------------------
# Fused kernel: conv(as matmul) + bias + ReLU + FC(BN2d & BN1d folded)
#               + log_softmax, all in VMEM.
#   x:      (TM, 64)    flattened 8x8 pixels per sample (f32)
#   gconv:  (64, 288)   conv folded to a dense pixel->feature matrix (bf16)
#   cbias:  (1, 288)    conv bias expanded per feature (f32)
#   wfc:    (288, 128)  fc weights with BN2d+BN1d folded in, zero-padded (bf16)
#   sfc:    (1, 128)    folded fc bias, padded with -1e30 (f32)
#   out:    (TM, 128)   log-probs (cols >= 10 are junk, optionally sliced off)
# ---------------------------------------------------------------------------
def fused_model_kernel(x_ref, gconv_ref, cbias_ref, wfc_ref, sfc_ref, o_ref):
    # conv1 as a single (TM,64)x(64,288) MXU matmul, bf16 in / f32 acc.
    xb = x_ref[...].astype(gconv_ref.dtype)
    h = jnp.dot(xb, gconv_ref[...], preferred_element_type=jnp.float32)
    h = jnp.maximum(h + cbias_ref[...], 0.0)            # + conv bias, ReLU

    # fc1 with BatchNorm2d (post-ReLU affine) and BatchNorm1d folded in.
    y = jnp.dot(h.astype(wfc_ref.dtype), wfc_ref[...],
                preferred_element_type=jnp.float32)
    y = y + sfc_ref[...]

    # log_softmax over the class (lane) dim; padded lanes hold -1e30 -> exp==0.
    m = jnp.max(y, axis=-1, keepdims=True)
    z = y - m
    lse = jnp.log(jnp.sum(jnp.exp(z), axis=-1, keepdims=True))
    o_ref[...] = z - lse


# ---------------------------------------------------------------------------
# Host-side constant folding
# ---------------------------------------------------------------------------
def _fold_bn(gamma, beta, mean, var, eps=1e-5):
    scale = gamma / jnp.sqrt(var + eps)
    shift = beta - mean * scale
    return scale, shift


@functools.lru_cache(maxsize=None)
def _conv_tap_pattern():
    """A[t, i, p] = 1 iff input pixel i = (oh+kh)*8 + (ow+kw) is tap
    t = kh*3 + kw of conv-output position p = oh*6 + ow (VALID 3x3 on 8x8)."""
    a = np.zeros((9, 64, 36), np.float32)
    for kh in range(3):
        for kw in range(3):
            t = kh * 3 + kw
            for oh in range(6):
                for ow in range(6):
                    a[t, (oh + kh) * 8 + (ow + kw), oh * 6 + ow] = 1.0
    return a


def _build_operands(params, compute_dtype):
    # Conv -> dense (64, 288) matrix; feature index = c*36 + oh*6 + ow, which
    # is exactly the torch.flatten(NCHW conv output, 1) ordering, so the FC
    # weights need no permutation.
    w_taps = params["conv_w"].reshape(8, 9)                       # (c, kh*3+kw)
    a = jnp.asarray(_conv_tap_pattern())                          # (9, 64, 36)
    gconv = jnp.einsum("ct,tip->icp", w_taps, a).reshape(64, 288)

    # Conv bias, expanded per feature (must stay before the ReLU).
    cbias = jnp.repeat(params["conv_b"], 36).reshape(1, 288)      # (1, 288)

    # BatchNorm2d (applied after ReLU) -> affine per feature.
    s1, t1 = _fold_bn(params["bn1_gamma"], params["bn1_beta"],
                      params["bn1_mean"], params["bn1_var"])
    s1f = jnp.repeat(s1, 36)                                      # (288,)
    t1f = jnp.repeat(t1, 36)                                      # (288,)

    # fc1 with BatchNorm1d folded in.
    s2, t2 = _fold_bn(params["bn2_gamma"], params["bn2_beta"],
                      params["bn2_mean"], params["bn2_var"])
    w_bn1d = params["fc_w"].T * s2[None, :]                       # (288, 10)
    b_bn1d = params["fc_b"] * s2 + t2                             # (10,)

    # Fold BN2d forward through the linear layer:
    #   (relu(h)*s1 + t1) @ W + b  ==  relu(h) @ (s1[:,None]*W) + (t1 @ W + b)
    wfold = s1f[:, None] * w_bn1d                                 # (288, 10)
    bfold = t1f @ w_bn1d + b_bn1d                                 # (10,)

    # Pad class dim 10 -> 128 lanes (lane-dense unmasked stores).
    wfold = jnp.pad(wfold, ((0, 0), (0, _PAD_CLASSES - _NUM_CLASSES)))
    sfc = jnp.pad(bfold.reshape(1, _NUM_CLASSES),
                  ((0, 0), (0, _PAD_CLASSES - _NUM_CLASSES)),
                  constant_values=_NEG_BIG)

    return (gconv.astype(compute_dtype), cbias,
            wfold.astype(compute_dtype), sfc)


def _round_up(v, m):
    return ((v + m - 1) // m) * m


def model_forward(x, params, *, block_rows=1024,
                  compute_dtype=jnp.bfloat16, return_padded=False):
    """x: (N, 1, 8, 8) float32 NCHW. Returns (N, 10) log-probs
    (or the padded (N, 128) array if return_padded=True; padded lanes are
    ~-1e30 so argmax / NLL consumers can skip the extra slicing HBM pass)."""
    n = x.shape[0]
    x_flat = x.reshape(n, 64).astype(jnp.float32)   # C=1 -> pixel-major rows
    gconv, cbias, wfold, sfc = _build_operands(params, compute_dtype)

    # Sublane-aligned batch tile; cap at ceil(n/2) so the grid has >= 2 steps
    # whenever possible (lets v7x megacore split the "parallel" axis).
    tm = min(block_rows, _round_up(n, 8),
             max(8, _round_up((n + 1) // 2, 8)))
    grid = (pl.cdiv(n, tm),)

    grid_spec = pltpu.PrefetchScalarGridSpec(
        num_scalar_prefetch=0,
        grid=grid,
        in_specs=[
            pl.BlockSpec((tm, 64), lambda i: (i, 0)),                 # x
            pl.BlockSpec((64, 288), lambda i: (0, 0)),                # conv mat
            pl.BlockSpec((1, 288), lambda i: (0, 0)),                 # conv bias
            pl.BlockSpec((288, _PAD_CLASSES), lambda i: (0, 0)),      # fc w
            pl.BlockSpec((1, _PAD_CLASSES), lambda i: (0, 0)),        # fc shift
        ],
        out_specs=pl.BlockSpec((tm, _PAD_CLASSES), lambda i: (i, 0)),
    )

    out_padded = pl.pallas_call(
        fused_model_kernel,
        out_shape=jax.ShapeDtypeStruct((n, _PAD_CLASSES), jnp.float32),
        grid_spec=grid_spec,
        compiler_params=pltpu.CompilerParams(
            dimension_semantics=("parallel",)),
    )(x_flat, gconv, cbias, wfold, sfc)

    if return_padded:
        return out_padded
    return out_padded[:, :_NUM_CLASSES]


# ---------------------------------------------------------------------------
# Pure-JAX reference (same eval-mode BN semantics) for sanity checking.
# ---------------------------------------------------------------------------
def _reference_forward(x, params):
    n = x.shape[0]
    y = jax.lax.conv_general_dilated(
        x, params["conv_w"], window_strides=(1, 1), padding="VALID",
        dimension_numbers=("NCHW", "OIHW", "NCHW"))
    y = y + params["conv_b"].reshape(1, 8, 1, 1)
    y = jnp.maximum(y, 0.0)
    s1, t1 = _fold_bn(params["bn1_gamma"], params["bn1_beta"],
                      params["bn1_mean"], params["bn1_var"])
    y = y * s1.reshape(1, 8, 1, 1) + t1.reshape(1, 8, 1, 1)
    y = y.reshape(n, 288)
    y = y @ params["fc_w"].T + params["fc_b"]
    s2, t2 = _fold_bn(params["bn2_gamma"], params["bn2_beta"],
                      params["bn2_mean"], params["bn2_var"])
    y = y * s2 + t2
    return jax.nn.log_softmax(y, axis=1)


def make_params(key):
    keys = jax.random.split(key, 8)
    return {
        "conv_w": jax.random.normal(keys[0], (8, 1, 3, 3), jnp.float32) * 0.2,
        "conv_b": jax.random.normal(keys[1], (8,), jnp.float32) * 0.1,
        "bn1_gamma": 1.0 + 0.1 * jax.random.normal(keys[2], (8,), jnp.float32),
        "bn1_beta": 0.1 * jax.random.normal(keys[3], (8,), jnp.float32),
        "bn1_mean": 0.05 * jnp.arange(8, dtype=jnp.float32),
        "bn1_var": 0.5 + 0.1 * jnp.arange(8, dtype=jnp.float32),
        "fc_w": jax.random.normal(keys[4], (10, 288), jnp.float32) * 0.05,
        "fc_b": jax.random.normal(keys[5], (10,), jnp.float32) * 0.1,
        "bn2_gamma": 1.0 + 0.1 * jax.random.normal(keys[6], (10,), jnp.float32),
        "bn2_beta": 0.1 * jax.random.normal(keys[7], (10,), jnp.float32),
        "bn2_mean": 0.02 * jnp.arange(10, dtype=jnp.float32),
        "bn2_var": 0.8 + 0.05 * jnp.arange(10, dtype=jnp.float32),
    }


if __name__ == "__main__":
    key = jax.random.PRNGKey(0)
    k_x, k_x2, k_p = jax.random.split(key, 3)
    params = make_params(k_p)

    fwd = jax.jit(model_forward,
                  static_argnames=("block_rows", "compute_dtype",
                                   "return_padded"))

    # Input: batch=2, channels=1, spatial=8x8 (conv 3x3 -> 6x6, fc in = 288)
    x = jax.random.normal(k_x, (2, 1, 8, 8), jnp.float32)
    ref = _reference_forward(x, params)

    # Default fast path: bf16 matmul operands, f32 accumulate/softmax.
    out = jax.block_until_ready(fwd(x, params))
    assert out.shape == (2, 10)
    assert jnp.allclose(out, ref, atol=5e-2, rtol=5e-2), "bf16 path mismatch"
    assert jnp.allclose(jnp.exp(out).sum(-1), 1.0, atol=1e-3)

    # Exact-algebra check (f32 matmuls): validates all the host-side folds.
    out_f32 = jax.block_until_ready(fwd(x, params, compute_dtype=jnp.float32))
    assert jnp.allclose(out_f32, ref, atol=1e-4, rtol=1e-4), "f32 path mismatch"

    # Non-multiple-of-tile batch (exercises partial last output block).
    x_big = jax.random.normal(k_x2, (37, 1, 8, 8), jnp.float32)
    ref_big = _reference_forward(x_big, params)
    out_big = jax.block_until_ready(fwd(x_big, params))
    assert out_big.shape == (37, 10)
    assert jnp.allclose(out_big, ref_big, atol=5e-2, rtol=5e-2), \
        "partial-tile batch mismatch"
    assert jnp.allclose(jnp.exp(out_big).sum(-1), 1.0, atol=1e-3)

    print("KERNEL_OK")
</pallas_src>

<mosaic_0001>
module attributes {stable_mosaic.version = 11 : i64} {
  func.func @fused_model_kernel(%arg0: i32, %arg1: memref<8x64xf32, #tpu.memory_space<vmem>>, %arg2: memref<64x288xbf16, #tpu.memory_space<vmem>>, %arg3: memref<1x288xf32, #tpu.memory_space<vmem>>, %arg4: memref<288x128xbf16, #tpu.memory_space<vmem>>, %arg5: memref<1x128xf32, #tpu.memory_space<vmem>>, %arg6: memref<8x128xf32, #tpu.memory_space<vmem>>) attributes {dimension_semantics = [#tpu.dimension_semantics<parallel>], iteration_bounds = array<i64: 1>, scalar_prefetch = 0 : i64, scratch_operands = 0 : i64, tpu.core_type = #tpu.core_type<tc>, window_params = [{transform_indices = @transform_0, window_bounds = array<i64: 8, 64>}, {pipeline_mode = #tpu.pipeline_mode<synchronous>, transform_indices = @transform_1, window_bounds = array<i64: 64, 288>}, {pipeline_mode = #tpu.pipeline_mode<synchronous>, transform_indices = @transform_2, window_bounds = array<i64: 1, 288>}, {pipeline_mode = #tpu.pipeline_mode<synchronous>, transform_indices = @transform_3, window_bounds = array<i64: 288, 128>}, {pipeline_mode = #tpu.pipeline_mode<synchronous>, transform_indices = @transform_4, window_bounds = array<i64: 1, 128>}, {transform_indices = @transform_5, window_bounds = array<i64: 8, 128>}]} {
    %c0 = arith.constant 0 : index
    %c0_0 = arith.constant 0 : index
    %0 = vector.load %arg1[%c0, %c0_0] : memref<8x64xf32, #tpu.memory_space<vmem>>, vector<8x64xf32>
    %1 = arith.truncf %0 : vector<8x64xf32> to vector<8x64xbf16>
    %c0_1 = arith.constant 0 : index
    %c0_2 = arith.constant 0 : index
    %2 = vector.load %arg2[%c0_1, %c0_2] : memref<64x288xbf16, #tpu.memory_space<vmem>>, vector<64x288xbf16>
    %cst = arith.constant dense<0.000000e+00> : vector<8x288xf32>
    %3 = tpu.matmul %1, %2, %cst {dimension_numbers = #tpu.dot_dimension_numbers<[1], [0], [0], [1], [0, 0, 1, 1], [], []>} : vector<8x64xbf16>, vector<64x288xbf16>, vector<8x288xf32> -> vector<8x288xf32>
    %c0_3 = arith.constant 0 : index
    %c0_4 = arith.constant 0 : index
    %4 = vector.load %arg3[%c0_3, %c0_4] : memref<1x288xf32, #tpu.memory_space<vmem>>, vector<1x288xf32>
    %5 = vector.broadcast %4 : vector<1x288xf32> to vector<8x288xf32>
    %6 = arith.addf %3, %5 : vector<8x288xf32>
    %cst_5 = arith.constant 0.000000e+00 : f32
    %7 = vector.broadcast %cst_5 : f32 to vector<8x288xf32>
    %8 = arith.maximumf %6, %7 : vector<8x288xf32>
    %9 = arith.truncf %8 : vector<8x288xf32> to vector<8x288xbf16>
    %c0_6 = arith.constant 0 : index
    %c0_7 = arith.constant 0 : index
    %10 = vector.load %arg4[%c0_6, %c0_7] : memref<288x128xbf16, #tpu.memory_space<vmem>>, vector<288x128xbf16>
    %cst_8 = arith.constant dense<0.000000e+00> : vector<8x128xf32>
    %11 = tpu.matmul %9, %10, %cst_8 {dimension_numbers = #tpu.dot_dimension_numbers<[1], [0], [0], [1], [0, 0, 1, 1], [], []>} : vector<8x288xbf16>, vector<288x128xbf16>, vector<8x128xf32> -> vector<8x128xf32>
    %c0_9 = arith.constant 0 : index
    %c0_10 = arith.constant 0 : index
    %12 = vector.load %arg5[%c0_9, %c0_10] : memref<1x128xf32, #tpu.memory_space<vmem>>, vector<1x128xf32>
    %13 = vector.broadcast %12 : vector<1x128xf32> to vector<8x128xf32>
    %14 = arith.addf %11, %13 : vector<8x128xf32>
    %cst_11 = arith.constant dense<0xFF800000> : vector<8xf32>
    %15 = vector.multi_reduction <maximumf>, %14, %cst_11 [1] : vector<8x128xf32> to vector<8xf32>
    %16 = vector.shape_cast %15 : vector<8xf32> to vector<8x1xf32>
    %17 = vector.broadcast %16 : vector<8x1xf32> to vector<8x128xf32>
    %18 = arith.subf %14, %17 : vector<8x128xf32>
    %19 = math.exp %18 : vector<8x128xf32>
    %cst_12 = arith.constant dense<0.000000e+00> : vector<8xf32>
    %20 = vector.multi_reduction <add>, %19, %cst_12 [1] : vector<8x128xf32> to vector<8xf32>
    %21 = vector.shape_cast %20 : vector<8xf32> to vector<8x1xf32>
    %22 = math.log %21 : vector<8x1xf32>
    %23 = vector.broadcast %22 : vector<8x1xf32> to vector<8x128xf32>
    %24 = arith.subf %18, %23 : vector<8x128xf32>
    %c0_13 = arith.constant 0 : index
    %c0_14 = arith.constant 0 : index
    %25 = vector.load %arg6[%c0_13, %c0_14] : memref<8x128xf32, #tpu.memory_space<vmem>>, vector<8x128xf32>
    tpu.vector_store %arg6[%c0_13, %c0_14], %24 {strides = array<i32>} : memref<8x128xf32, #tpu.memory_space<vmem>>, vector<8x128xf32>,
    return
  }
  func.func @transform_0(%arg0: i32) -> (i32, i32) {
    %c0_i32 = arith.constant 0 : i32
    %c0_i32_0 = arith.constant 0 : i32
    return %arg0, %c0_i32 : i32, i32
  }
  func.func @transform_1(%arg0: i32) -> (i32, i32) {
    %c0_i32 = arith.constant 0 : i32
    %c0_i32_0 = arith.constant 0 : i32
    %c0_i32_1 = arith.constant 0 : i32
    return %c0_i32, %c0_i32_0 : i32, i32
  }
  func.func @transform_2(%arg0: i32) -> (i32, i32) {
    %c0_i32 = arith.constant 0 : i32
    %c0_i32_0 = arith.constant 0 : i32
    %c0_i32_1 = arith.constant 0 : i32
    return %c0_i32, %c0_i32_0 : i32, i32
  }
  func.func @transform_3(%arg0: i32) -> (i32, i32) {
    %c0_i32 = arith.constant 0 : i32
    %c0_i32_0 = arith.constant 0 : i32
    %c0_i32_1 = arith.constant 0 : i32
    return %c0_i32, %c0_i32_0 : i32, i32
  }
  func.func @transform_4(%arg0: i32) -> (i32, i32) {
    %c0_i32 = arith.constant 0 : i32
    %c0_i32_0 = arith.constant 0 : i32
    %c0_i32_1 = arith.constant 0 : i32
    return %c0_i32, %c0_i32_0 : i32, i32
  }
  func.func @transform_5(%arg0: i32) -> (i32, i32) {
    %c0_i32 = arith.constant 0 : i32
    %c0_i32_0 = arith.constant 0 : i32
    return %arg0, %c0_i32 : i32, i32
  }
}

</mosaic_0001>

<bundles_post_ra>
// kernel: model_forward.1
= control target key start
LH: loop header
LB: loop body
LE: loop exit
PB: predicated region body
PF: predicated region fallthrough
CT: control target
= control target key end

     0   :  { %10 = vsyncpa [#allocation3], 0  ;;  %v626_v2 = vmov 0   ;;  %vm121_vm0 = vcmask 523264   ;;  %v627_v17 = vmov 0.0   ;;  %vm628_vm1 = vmmov 0   ;;  %s777_s0 = inlined_call_operand.vmem [shape: f32[2,64], index: 0, kind: input, shape index: {}]   ;;  %s778_s1 = inlined_call_operand.vmem [shape: bf16[64,288], index: 1, kind: input, shape index: {}]   ;;  %s779_s2 = inlined_call_operand.vmem [shape: f32[1,288], index: 2, kind: input, shape index: {}]   ;;  %s780_s3 = inlined_call_operand.vmem [shape: bf16[288,128], index: 3, kind: input, shape index: {}]   ;;  %s781_s4 = inlined_call_operand.vmem [shape: f32[1,128], index: 4, kind: input, shape index: {}]   ;;  %s782_s5 = inlined_call_operand.hbm [shape: f32[2,128], index: 5, kind: output, shape index: {}]  }
   0x1   :  { %v564_v0 = vld [vmem:[%s778_s1 + $0x4] ss:$12 sps:$4 sm:$0xff]   ;;  %v566_v1 = vld [vmem:[%s778_s1] ss:$12 sps:$4 sm:$0xff]   ;;  %157 = vmatprep.mubr.bf16.mxu1 %v626_v2  ;;  %v567_v3 = vld [vmem:[%s778_s1 + $0x1c] ss:$12 sps:$4 sm:$0xff]   ;;  %v42_v34 = vlaneseq }
   0x2   :  { %125 = vmatprep.subr.bf16.mxu1 %v564_v0  ;;  %v569_v4 = vld [vmem:[%s778_s1 + $0x18] ss:$12 sps:$4 sm:$0xff]   ;;  %v570_v5 = vld [vmem:[%s778_s1 + $0x34] ss:$12 sps:$4 sm:$0xff]   ;;  %v572_v6 = vld [vmem:[%s778_s1 + $0x30] ss:$12 sps:$4 sm:$0xff]  }
   0x3   :  { %126 = vmatpush1.bf16.msra.mxu1 %v566_v1  ;;  %v573_v7 = vld [vmem:[%s778_s1 + $0x4c] ss:$12 sps:$4 sm:$0xff]   ;;  %v575_v8 = vld [vmem:[%s778_s1 + $0x48] ss:$12 sps:$4 sm:$0xff]   ;;  %v22_v9 = vld [vmem:[%s777_s0] sm:$0xff]  ;;  %v43_v35 = vshrl.u32 %v42_v34, 7 }
   0x4   :  { %127 = vmatprep.subr.bf16.mxu1 %v567_v3  ;;  %v580_v10 = vld [vmem:[%s780_s3 + $0x40] sm:$0xff]   ;;  %v582_v12 = vld [vmem:[%s780_s3 + $0x48] sm:$0xff]   ;;  %v584_v14 = vld [vmem:[%s780_s3 + $0x50] sm:$0xff]   ;;  %v23_v15 = vpack.c.bf16 %v22_v9, %v22_v9  ;;  %vm363_vm2 = vcmask 261120  }
   0x5   :  { %v581_v11 = vld [vmem:[%s780_s3] sm:$0xff]   ;;  %513 = vmatprep.subr.bf16.mxu0 %v580_v10  ;;  %v583_v13 = vld [vmem:[%s780_s3 + $0x8] sm:$0xff]   ;;  %v585_v18 = vld [vmem:[%s780_s3 + $0x10] sm:$0xff]   ;;  %v44_v36 = vsub.s32 0, %v43_v35  ;;  %v48_v38 = vsub.s32 1, %v43_v35  ;;  %v52_v51 = vsub.s32 2, %v43_v35 }
   0x6   :  { %514 = vmatpush3.bf16.msra.mxu0 %v581_v11  ;;  %v576_v16 = vld [vmem:[%s778_s1 + $0x8] ss:$12 sps:$4 sm:$0xff]   ;;  %v586_v19 = vld [vmem:[%s780_s3 + $0x58] sm:$0xff]   ;;  %v577_v20 = vld [vmem:[%s778_s1 + $0x20] ss:$12 sps:$4 sm:$0xff]  }
   0x7   :  { %128 = vmatpush1.bf16.msra.mxu1 %v569_v4  ;;  %515 = vmatprep.subr.bf16.mxu0 %v582_v12  ;;  %v587_v21 = vld [vmem:[%s780_s3 + $0x18] sm:$0xff]   ;;  %v588_v23 = vld [vmem:[%s780_s3 + $0x60] sm:$0xff]   ;;  %v590_v25 = vld [vmem:[%s780_s3 + $0x68] sm:$0xff]  }
   0x8   :  { %129 = vmatprep.subr.bf16.mxu1 %v570_v5  ;;  %v578_v22 = vld [vmem:[%s778_s1 + $0x38] ss:$12 sps:$4 sm:$0xff]   ;;  %v579_v26 = vld [vmem:[%s778_s1 + $0x50] ss:$12 sps:$4 sm:$0xff]   ;;  %v591_v27 = vld [vmem:[%s780_s3 + $0x28] sm:$0xff]  }
   0x9   :  { %v589_v24 = vld [vmem:[%s780_s3 + $0x20] sm:$0xff]   ;;  %v592_v28 = vld [vmem:[%s780_s3 + $0x70] sm:$0xff]   ;;  %v594_v30 = vld [vmem:[%s780_s3 + $0x78] sm:$0xff]  }
   0xa   :  { %516 = vmatpush3.bf16.msra.mxu0 %v583_v13  ;;  %v593_v29 = vld [vmem:[%s780_s3 + $0x30] sm:$0xff]   ;;  %v595_v31 = vld [vmem:[%s780_s3 + $0x38] sm:$0xff]   ;;  %v596_v32 = vld [vmem:[%s780_s3 + $0x80] sm:$0xff]  }
   0xb   :  { %130 = vmatpush1.bf16.msra.mxu1 %v572_v6  ;;  %517 = vmatprep.subr.bf16.mxu0 %v584_v14  ;;  %v597_v33 = vld [vmem:[%s780_s3 + $0x88] sm:$0xff]   ;;  %v40_v37 = vld [vmem:[%s779_s2] sm:$0x7] }
   0xc   :  { %131 = vmatprep.subr.bf16.mxu1 %v573_v7  ;;  %v45_v39 = vrot.slane %v40_v37, %v44_v36  ;;  %v49_v40 = vrot.slane %v40_v37, %v48_v38  ;;  %v53_v52 = vrot.slane %v40_v37, %v52_v51  ;;  %v488_v1 = vld [vmem:[%s781_s4] ss:$0 sm:$0xff] }
   0xe   :  { %518 = vmatpush3.bf16.msra.mxu0 %v585_v18 }
   0xf   :  { %132 = vmatpush1.bf16.msra.mxu1 %v575_v8  ;;  %519 = vmatprep.subr.bf16.mxu0 %v586_v19 }
  0x10   :  { %538 = vmatprep.subr.bf16.mxu1 %v627_v17 }
  0x12   :  { %486 = vmatmul.mubr.msk.bf16.vlgmr.msra.gmra.mrb[0].mxu1 %vm121_vm0, %v23_v15  ;;  %520 = vmatpush3.bf16.msra.mxu0 %v587_v21 }
  0x13   :  { %539 = vmatpush3.bf16.msra.mxu1 %v576_v16  ;;  %546 = vmatprep.mubr.msk.bf16.mxu1 %vm628_vm1, %v627_v17 }
  0x14   :  { %540 = vmatprep.subr.bf16.mxu1 %v627_v17  ;;  %521 = vmatprep.subr.bf16.mxu0 %v588_v23 }
  0x16   :  { %522 = vmatpush3.bf16.msra.mxu0 %v589_v24 }
  0x17   :  { %541 = vmatpush3.bf16.msra.mxu1 %v577_v20  ;;  %523 = vmatprep.subr.bf16.mxu0 %v590_v25 }
  0x18   :  { %542 = vmatprep.subr.bf16.mxu1 %v627_v17 }
  0x1a   :  { %524 = vmatpush3.bf16.msra.mxu0 %v591_v27 }
  0x1b   :  { %543 = vmatpush3.bf16.msra.mxu1 %v578_v22  ;;  %525 = vmatprep.subr.bf16.mxu0 %v592_v28 }
  0x1c   :  { %544 = vmatprep.subr.bf16.mxu1 %v627_v17 }
  0x1e   :  { %526 = vmatpush3.bf16.msra.mxu0 %v593_v29 }
  0x1f   :  { %545 = vmatpush3.bf16.msra.mxu1 %v579_v26  ;;  %527 = vmatprep.subr.bf16.mxu0 %v594_v30 }
  0x20   :  { %550 = vmatprep.subr.bf16.mxu1 %v627_v17 }
  0x22   :  { %547 = vmatmul.mubr.msk.bf16.vlgmr.msra.gmra.mrb[4].mxu1 %vm121_vm0, %v23_v15  ;;  %528 = vmatpush3.bf16.msra.mxu0 %v595_v31 }
  0x23   :  { %554 = vmatprep.mubr.msk.bf16.mxu1 %vm628_vm1, %v627_v17  ;;  %551 = vmatpush3.bf16.msra.mxu1 %v596_v32 }
  0x24   :  { %552 = vmatprep.subr.bf16.mxu1 %v627_v17 }
  0x27   :  { %553 = vmatpush3.bf16.msra.mxu1 %v597_v33 }
  0xe5   :  { %v159_v41 = vpop.f32.mrb[0].mxu1 }
  0xe6   :  { %v160_v42 = vadd.f32 %v159_v41, %v45_v39  ;;  %v161_v43 = vpop.f32.mrb[1].mxu1 }
  0xe7   :  { %v162_v44 = vadd.f32 %v161_v43, %v49_v40  ;;  %v163_v45 = vpop.f32.mrb[2].mxu1 }
  0xe8   :  { %v206_v46 = vmax.f32 %v160_v42, 0.0  ;;  %v164_v47 = vpop.f32.mrb[3].mxu1 }
  0xe9   :  { %v207_v48 = vmax.f32 %v162_v44, 0.0 }
  0xea   :  { %v209_v49 = vpack.c.bf16 %v206_v46, %v206_v46 }
  0xeb   :  { %v210_v50 = vpack.c.bf16 %v207_v48, %v207_v48 }
  0xed   :  { %399 = vmatprep.mubr.bf16.mxu0 %v210_v50 }
  0xee   :  { %400 = vmatmul.mubr.bf16.vlgmr.msra.gmra.mrb[0].mxu0 %v209_v49 }
  0xf5   :  { %v200_v53 = vpop.f32.mrb[4].mxu1 }
  0xf6   :  { %v201_v54 = vadd.f32 %v200_v53, %v53_v52  ;;  %v548_v55 = vpop.f32.mrb[5].mxu1 }
  0xf7   :  { %v203_v56 = vpop.f32.mrb[6].mxu1 }
  0xf8   :  { %v208_v57 = vmax.f32 %v201_v54, 0.0  ;;  %v549_v58 = vpop.f32.mrb[7].mxu1 }
  0xfa   :  { %v211_v59 = vpack.c.bf16 %v208_v57, %v208_v57 }
  0xfc   :  { %555 = vmatmul.mubr.msk.bf16.vlgmr.msra.gmra.mrb[8].mxu1 %vm363_vm2, %v211_v59 }
 0x1c1   :  { %v529_v60 = vpop.f32.mrb[0].mxu0 }
 0x1c2   :  { %v530_v61 = vpop.f32.mrb[1].mxu0 }
 0x1c3   :  { %v531_v62 = vadd.f32 %v530_v61, %v529_v60  ;;  %v532_v63 = vpop.f32.mrb[2].mxu0 }
 0x1c4   :  { %v533_v0 = vpop.f32.mrb[3].mxu0 }
 0x1c5   :  { %v402_v2 = vadd.f32 %v531_v62, %v488_v1 }
 0x1cf   :  { %v441_v3 = vpop.f32.mrb[8].mxu1 }
 0x1d0   :  { %v442_v4 = vadd.f32 %v441_v3, %v402_v2  ;;  %v556_v5 = vpop.f32.mrb[9].mxu1 }
 0x1d1   :  { %v444_v6 = vpop.f32.mrb[10].mxu1 }
 0x1d2   :  { %v557_v7 = vpop.f32.mrb[11].mxu1  ;;  %447 = vmax.xlane.f32.xlu0 %v442_v4 }
 0x25f   :  { %v448_v8 = vpop.xlane.xlu0 %447 }
 0x260   :  { %v449_v9 = vsub.f32 %v442_v4, %v448_v8 }
 0x262   :  { %v450_v10 = vmul.f32 1.442695, %v449_v9 }
 0x264   :  { %598 = vpow2.f32 %v450_v10 }
 0x26e   :  { %v599_v11 = vpop.eup %598 }
 0x26f   :  { %452 = vadd.xlane.f32.xlu0 %v599_v11 }
 0x2fc   :  { %v453_v12 = vpop.xlane.xlu0 %452 }
 0x2fd   :  { %600 = vlog2.f32 %v453_v12 }
 0x307   :  { %v601_v13 = vpop.eup %600 }
 0x308   :  { %v455_v14 = vmul.f32 0.6931472, %v601_v13 }
 0x30a   :  { %v456_v15 = vsub.f32 %v449_v9, %v455_v14 }
 0x30c   :  { %457 = vst [vmem:[#allocation2] sm:$0xff] %v456_v15 }
 0x30d   :  { %462 = vsyncadd [#allocation3], 96  ;;  %s629_s4 = smov [#allocation2]  }
 0x30e   :  { %s463_s29 = sshll.u32 %s629_s4, 4  ;;  %s464_s29 = int_to_ptr.vmem [resolvable:$true] %s463_s29 }
 0x30f   :  { %s602_s30 = scalar_lea.vmem %s464_s29, 32  ;;  %s606_s6 = scalar_lea.vmem %s464_s29, 128 }
 0x310   :  { %p603_p0 = scmp.ne.s32.totalorder %s464_s29, %s602_s30  ;;  %p607_p1 = scmp.lt.s32.totalorder %s464_s29, %s464_s29 }
 0x311   :  { %p608_p2 = scmp.lt.s32.totalorder %s606_s6, %s602_s30 }
 0x313   :  { %p609_p3 = por %p608_p2, %p607_p1 }
 0x315   :  { %p610_p4 = pnand %p609_p3, %p603_p0 }
 0x317   :  { %613 = shalt.err (!%p610_p4)
}
 0x318   :  { %s614_s9 = scalar_lea.hbm %s782_s5, 32 }
 0x319   :  { %p615_p5 = scmp.ne.s32.totalorder %s782_s5, %s614_s9  ;;  %p618_p6 = scmp.lt.u32.totalorder %s614_s9, %s782_s5 }
 0x31b   :  { %p620_p7 = pnand %p618_p6, %p615_p5 }
 0x31d   :  { %623 = shalt.err (!%p620_p7)
}
 0x31e   :  { %s630_s14 = smov 32   ;;  %s631_s15 = smov 2  }
 0x31f   :  { %469 = dma.vmem_to_hbm [thread:$0]  %s464_s29, 32, %s782_s5, [#allocation3], %s630_s14, %s630_s14, %s631_s15  }
 0x320   :  { %624 = dma.done.wait [#allocation3], 128  }
 0x321   :  { %625 = vsyncadd [#allocation3], 4294967168 }
 0x322   :  { %473 = vsyncpa [#allocation3], 1 }

</bundles_post_ra>
